<compile_context>
chip_gen: v6e
topology: v6e:2x2x1
jax: 0.10.0
libtpu: 0.0.40
codegen_flags: <defaults>
</compile_context>

<pallas_src>
import functools

import jax
import jax.numpy as jnp
from jax.experimental import pallas as pl
from jax.experimental.pallas import tpu as pltpu


def _cdiv(a, b):
    return (a + b - 1) // b


def _round_up(x, m):
    return _cdiv(x, m) * m


def _numerical_loss_kernel(isc_ref, fsc_ref, logits_ref, tgt_ref, out_ref,
                           acc_ce, acc_num, acc_cls, acc_mcnt,
                           *, gamma, num_classes):
    i = pl.program_id(0)

    @pl.when(i == 0)
    def _():
        acc_ce[...] = jnp.zeros_like(acc_ce)
        acc_num[...] = jnp.zeros_like(acc_num)
        acc_cls[...] = jnp.zeros_like(acc_cls)
        acc_mcnt[...] = jnp.zeros_like(acc_mcnt)

    uper = isc_ref[0]          # numeric-class boundary (targets < uper are numeric)
    b_valid = isc_ref[1]       # true (un-padded) batch size
    alpha = fsc_ref[0]

    tgt = tgt_ref[...]                                # (R, 128) int32
    r, lanes = tgt.shape

    # global sample index of every (row, lane) slot -> validity mask
    row_ids = jax.lax.broadcasted_iota(jnp.int32, (r, lanes), 0)
    lane_ids = jax.lax.broadcasted_iota(jnp.int32, (r, lanes), 1)
    sample = (i * r + row_ids) * lanes + lane_ids
    valid = sample < b_valid                          # (R, 128) bool
    numer = jnp.logical_and(tgt < uper, valid)        # numeric & valid

    # pass 1 over classes: running max + gt logit (dense elementwise ops only)
    col_max = jnp.full((r, lanes), -jnp.inf, dtype=jnp.float32)
    gt_logit = jnp.zeros((r, lanes), dtype=jnp.float32)
    for cls in range(num_classes):
        x = logits_ref[cls].astype(jnp.float32)       # (R, 128)
        col_max = jnp.maximum(col_max, x)
        gt_logit = jnp.where(tgt == cls, x, gt_logit)

    # pass 2 (descending): sum(exp) and first-index argmax on raw logits
    sez = jnp.zeros((r, lanes), dtype=jnp.float32)
    pred = jnp.zeros((r, lanes), dtype=jnp.int32)
    for cls in reversed(range(num_classes)):
        x = logits_ref[cls].astype(jnp.float32)
        sez = sez + jnp.exp(x - col_max)
        pred = jnp.where(x >= col_max, cls, pred)     # smallest idx among maxima

    # per-sample CE via log-sum-exp (no probs tensor, no divide)
    ce_per = jnp.log(sez) - (gt_logit - col_max)      # (R, 128)

    # weights = alpha * |pred - gt| ** gamma  (gamma special-cased at compile time)
    absdiff = jnp.abs(pred - tgt).astype(jnp.float32)
    if gamma == 0.5:
        powed = jnp.sqrt(absdiff)
    elif gamma == 1.0:
        powed = absdiff
    elif gamma == 2.0:
        powed = absdiff * absdiff
    else:                      # generic safe pow (0 ** gamma = 0)
        powed = jnp.where(absdiff > 0.0,
                          jnp.exp(gamma * jnp.log(jnp.maximum(absdiff, 1e-30))),
                          0.0)
    w = alpha * powed

    # NaN/Inf-safe masked accumulation (dense VPU adds each tile, no reductions)
    ce_valid = jnp.where(valid, ce_per, 0.0)
    ce_numer = jnp.where(numer, ce_per, 0.0)
    acc_ce[...] += ce_valid
    acc_num[...] += jnp.where(numer, (1.0 + w) * ce_per, 0.0)
    acc_cls[...] += ce_valid - ce_numer
    acc_mcnt[...] += numer.astype(jnp.float32)

    @pl.when(i == pl.num_programs(0) - 1)
    def _():
        out_ref[0] = jnp.sum(acc_ce[...])     # CE sum over all real samples
        out_ref[1] = jnp.sum(acc_num[...])    # numeric-class weighted loss sum
        out_ref[2] = jnp.sum(acc_cls[...])    # non-numeric CE sum
        out_ref[3] = jnp.sum(acc_mcnt[...])   # numeric sample count
        out_ref[4] = 0.0
        out_ref[5] = 0.0
        out_ref[6] = 0.0
        out_ref[7] = 0.0


def _pick_tiling(rows_total, num_classes, logit_bytes, max_block_samples,
                 vmem_budget_bytes):
    """Balanced batch tiling in units of 128-sample rows."""
    # per-sample VMEM bytes: double-buffered logits + targets, plus accumulators
    per_sample = 2 * num_classes * logit_bytes + 2 * 4 + 4 * 4
    budget_samples = max(128, vmem_budget_bytes // per_sample)
    max_rows = max(1, min(budget_samples, max_block_samples) // 128)
    num_tiles = _cdiv(rows_total, max_rows)
    rows_per_tile = _cdiv(rows_total, num_tiles)
    if rows_per_tile != rows_total:
        # respect the native sublane tiling of the logits dtype (8 f32 / 16 bf16)
        sub_mult = 8 * max(1, 4 // logit_bytes)
        rows_per_tile = min(_round_up(rows_per_tile, sub_mult), rows_total)
    num_tiles = _cdiv(rows_total, rows_per_tile)
    return rows_per_tile, num_tiles


def numerical_loss(inputs, targets, *, uper_numer_idx, alpha=1.0,
                   keep_ratio=1.0, gamma=0.5, min_keep=1,
                   block_b=None, vmem_budget_bytes=8 << 20,
                   inputs_are_transposed=False):
    """inputs: (B, C) logits (f32 or bf16) — or (C, B) if inputs_are_transposed.
    targets: (B,) int class ids."""
    # keep_ratio == 1.0  =>  OHEM top-k keeps every cls loss, valid_num == cls_cnt.
    # TODO(synk): dynamic top-k for keep_ratio < 1 needs a data-dependent k;
    #             only keep_ratio == 1.0 is supported here.
    assert keep_ratio == 1.0, "only keep_ratio == 1.0 is implemented"
    del min_keep

    if inputs_are_transposed:
        c, b = inputs.shape
        logits_t = inputs                             # (C, B): no extra HBM pass
    else:
        b, c = inputs.shape
        # TODO(synk): this transpose is a full extra HBM read+write of the
        # logits; producers should emit (C, B) and set inputs_are_transposed.
        logits_t = inputs.T

    targets = targets.reshape(-1).astype(jnp.int32)

    # pad the batch only to the next multiple of 128 (lane width); the ragged
    # last grid tile is handled by the in-kernel validity mask instead of pad.
    b_pad = _round_up(b, 128)
    if b_pad != b:
        logits_t = jnp.pad(logits_t, ((0, 0), (0, b_pad - b)))
        targets = jnp.pad(targets, (0, b_pad - b))
    rows_total = b_pad // 128

    # dense layout: (C, rows, 128) and (rows, 128) — free row-major reshapes
    logits_3d = logits_t.reshape(c, rows_total, 128)
    tgt_3d = targets.reshape(rows_total, 128)

    logit_bytes = jnp.dtype(inputs.dtype).itemsize
    max_block = block_b if block_b is not None else 65536
    rows_per_tile, num_tiles = _pick_tiling(rows_total, c, logit_bytes,
                                            max_block, vmem_budget_bytes)
    tile_samples = rows_per_tile * 128

    vmem_need = (2 * c * tile_samples * logit_bytes   # double-buffered logits
                 + 2 * tile_samples * 4               # double-buffered targets
                 + 4 * tile_samples * 4)              # f32 accumulators
    vmem_limit = int(min(max(2 * vmem_need + (2 << 20), 16 << 20), 48 << 20))

    iscalars = jnp.array([uper_numer_idx, b], dtype=jnp.int32)
    fscalars = jnp.array([alpha], dtype=jnp.float32)

    kernel = functools.partial(_numerical_loss_kernel, gamma=float(gamma),
                               num_classes=c)

    # TODO(synk): on v7x (2 TensorCores) a leading core-parallel grid axis with
    #             per-core partial sums would give up to ~2x; kept single-core
    #             (grid loop) here for portability / compile safety.
    sums = pl.pallas_call(
        kernel,
        out_shape=jax.ShapeDtypeStruct((8,), jnp.float32),
        grid_spec=pltpu.PrefetchScalarGridSpec(
            num_scalar_prefetch=2,
            grid=(num_tiles,),
            in_specs=[
                pl.BlockSpec((c, rows_per_tile, 128),
                             lambda i, isc, fsc: (0, i, 0)),
                pl.BlockSpec((rows_per_tile, 128),
                             lambda i, isc, fsc: (i, 0)),
            ],
            out_specs=pl.BlockSpec(memory_space=pltpu.MemorySpace.SMEM),
            scratch_shapes=[pltpu.VMEM((rows_per_tile, 128), jnp.float32)] * 4,
        ),
        compiler_params=pltpu.CompilerParams(
            dimension_semantics=("arbitrary",),
            vmem_limit_bytes=vmem_limit),
    )(iscalars, fscalars, logits_3d, tgt_3d)

    ce_sum, numer_sum, cls_sum, numer_cnt = sums[0], sums[1], sums[2], sums[3]
    valid_cnt = jnp.float32(b)                         # statically known == B
    cls_cnt = valid_cnt - numer_cnt                    # non-numeric sample count

    celoss_v = ce_sum / b                              # nn.CrossEntropyLoss (mean)
    numer_size = numer_cnt                             # 0 when no numeric samples
    cls_size = cls_cnt                                 # == valid_num for keep_ratio=1

    numerical = (cls_sum + numer_sum) / (numer_size + cls_size + 1e-09)
    return {
        'numerical_loss': numerical,
        'scaler': celoss_v / numerical,
        'cls_l': cls_sum / (cls_size + 1e-09),
        'count_l': numer_sum / (numer_size + 1e-09),
        'ohem_num': cls_size,
        'ohem_pre_num': cls_cnt,
        'number_pre_num': numer_cnt,
    }


if __name__ == "__main__":
    key = jax.random.PRNGKey(0)
    k1, k2 = jax.random.split(key)

    B, C = 8, 6                 # B samples, C classes
    UPER_NUMER_IDX = 4          # classes < 4 are "numeric" classes

    logits = jax.random.normal(k1, (B, C), dtype=jnp.float32)
    targets = jax.random.randint(k2, (B,), 0, C, dtype=jnp.int32)

    out = numerical_loss(logits, targets, uper_numer_idx=UPER_NUMER_IDX,
                         alpha=1.0, keep_ratio=1.0, gamma=0.5, min_keep=1)
    out = jax.tree_util.tree_map(jax.block_until_ready, out)
    print("KERNEL_OK")
</pallas_src>

<mosaic_0001>
module attributes {stable_mosaic.version = 11 : i64} {
  func.func @_numerical_loss_kernel(%arg0: i32, %arg1: memref<2xi32, #tpu.memory_space<smem>>, %arg2: memref<1xf32, #tpu.memory_space<smem>>, %arg3: memref<6x1x128xf32, #tpu.memory_space<vmem>>, %arg4: memref<1x128xi32, #tpu.memory_space<vmem>>, %arg5: memref<8xf32, #tpu.memory_space<smem>>, %arg6: memref<1x128xf32, #tpu.memory_space<vmem>>, %arg7: memref<1x128xf32, #tpu.memory_space<vmem>>, %arg8: memref<1x128xf32, #tpu.memory_space<vmem>>, %arg9: memref<1x128xf32, #tpu.memory_space<vmem>>) attributes {dimension_semantics = [#tpu.dimension_semantics<arbitrary>], iteration_bounds = array<i64: 1>, scalar_prefetch = 2 : i64, scratch_operands = 4 : i64, tpu.core_type = #tpu.core_type<tc>, window_params = [{transform_indices = @transform_0, window_bounds = array<i64: 6, 1, 128>}, {transform_indices = @transform_1, window_bounds = array<i64: 1, 128>}, {transform_indices = @transform_2, window_bounds = array<i64: 8>}]} {
    %c0_i32 = arith.constant 0 : i32
    %0 = arith.cmpi eq, %arg0, %c0_i32 : i32
    %1 = arith.extui %0 : i1 to i32
    %c0_i32_0 = arith.constant 0 : i32
    %2 = arith.cmpi ne, %1, %c0_i32_0 : i32
    scf.if %2 {
      %cst_69 = arith.constant 0.000000e+00 : f32
      %144 = vector.broadcast %cst_69 : f32 to vector<1x128xf32>
      %c0_70 = arith.constant 0 : index
      %c0_71 = arith.constant 0 : index
      %145 = vector.load %arg6[%c0_70, %c0_71] : memref<1x128xf32, #tpu.memory_space<vmem>>, vector<1x128xf32>
      tpu.vector_store %arg6[%c0_70, %c0_71], %144 {strides = array<i32>} : memref<1x128xf32, #tpu.memory_space<vmem>>, vector<1x128xf32>,
      %cst_72 = arith.constant 0.000000e+00 : f32
      %146 = vector.broadcast %cst_72 : f32 to vector<1x128xf32>
      %c0_73 = arith.constant 0 : index
      %c0_74 = arith.constant 0 : index
      %147 = vector.load %arg7[%c0_73, %c0_74] : memref<1x128xf32, #tpu.memory_space<vmem>>, vector<1x128xf32>
      tpu.vector_store %arg7[%c0_73, %c0_74], %146 {strides = array<i32>} : memref<1x128xf32, #tpu.memory_space<vmem>>, vector<1x128xf32>,
      %cst_75 = arith.constant 0.000000e+00 : f32
      %148 = vector.broadcast %cst_75 : f32 to vector<1x128xf32>
      %c0_76 = arith.constant 0 : index
      %c0_77 = arith.constant 0 : index
      %149 = vector.load %arg8[%c0_76, %c0_77] : memref<1x128xf32, #tpu.memory_space<vmem>>, vector<1x128xf32>
      tpu.vector_store %arg8[%c0_76, %c0_77], %148 {strides = array<i32>} : memref<1x128xf32, #tpu.memory_space<vmem>>, vector<1x128xf32>,
      %cst_78 = arith.constant 0.000000e+00 : f32
      %150 = vector.broadcast %cst_78 : f32 to vector<1x128xf32>
      %c0_79 = arith.constant 0 : index
      %c0_80 = arith.constant 0 : index
      %151 = vector.load %arg9[%c0_79, %c0_80] : memref<1x128xf32, #tpu.memory_space<vmem>>, vector<1x128xf32>
      tpu.vector_store %arg9[%c0_79, %c0_80], %150 {strides = array<i32>} : memref<1x128xf32, #tpu.memory_space<vmem>>, vector<1x128xf32>,
    } else {
    }
    %c0 = arith.constant 0 : index
    %3 = memref.load %arg1[%c0] : memref<2xi32, #tpu.memory_space<smem>>
    %c1 = arith.constant 1 : index
    %4 = memref.load %arg1[%c1] : memref<2xi32, #tpu.memory_space<smem>>
    %c0_1 = arith.constant 0 : index
    %5 = memref.load %arg2[%c0_1] : memref<1xf32, #tpu.memory_space<smem>>
    %c0_2 = arith.constant 0 : index
    %c0_3 = arith.constant 0 : index
    %6 = vector.load %arg4[%c0_2, %c0_3] : memref<1x128xi32, #tpu.memory_space<vmem>>, vector<1x128xi32>
    %7 = tpu.iota {dimensions = array<i32: 0>} : vector<1x128xi32>
    %8 = tpu.iota {dimensions = array<i32: 1>} : vector<1x128xi32>
    %c1_i32 = arith.constant 1 : i32
    %9 = arith.muli %arg0, %c1_i32 : i32
    %10 = vector.broadcast %9 : i32 to vector<1x128xi32>
    %11 = arith.addi %10, %7 : vector<1x128xi32>
    %c128_i32 = arith.constant 128 : i32
    %12 = vector.broadcast %c128_i32 : i32 to vector<1x128xi32>
    %13 = arith.muli %11, %12 : vector<1x128xi32>
    %14 = arith.addi %13, %8 : vector<1x128xi32>
    %15 = vector.broadcast %4 : i32 to vector<1x128xi32>
    %16 = arith.cmpi slt, %14, %15 : vector<1x128xi32>
    %17 = vector.broadcast %3 : i32 to vector<1x128xi32>
    %18 = arith.cmpi slt, %6, %17 : vector<1x128xi32>
    %19 = arith.andi %18, %16 : vector<1x128xi1>
    %cst = arith.constant 0xFF800000 : f32
    %20 = vector.broadcast %cst : f32 to vector<1x128xf32>
    %cst_4 = arith.constant 0.000000e+00 : f32
    %21 = vector.broadcast %cst_4 : f32 to vector<1x128xf32>
    %c0_5 = arith.constant 0 : index
    %c0_6 = arith.constant 0 : index
    %c0_7 = arith.constant 0 : index
    %22 = vector.load %arg3[%c0_5, %c0_6, %c0_7] : memref<6x1x128xf32, #tpu.memory_space<vmem>>, vector<1x1x128xf32>
    %23 = vector.shape_cast %22 : vector<1x1x128xf32> to vector<1x128xf32>
    %24 = arith.maximumf %20, %23 : vector<1x128xf32>
    %c0_i32_8 = arith.constant 0 : i32
    %25 = vector.broadcast %c0_i32_8 : i32 to vector<1x128xi32>
    %26 = arith.cmpi eq, %6, %25 : vector<1x128xi32>
    %27 = arith.select %26, %23, %21 : vector<1x128xi1>, vector<1x128xf32>
    %c1_9 = arith.constant 1 : index
    %c0_10 = arith.constant 0 : index
    %c0_11 = arith.constant 0 : index
    %28 = vector.load %arg3[%c1_9, %c0_10, %c0_11] : memref<6x1x128xf32, #tpu.memory_space<vmem>>, vector<1x1x128xf32>
    %29 = vector.shape_cast %28 : vector<1x1x128xf32> to vector<1x128xf32>
    %30 = arith.maximumf %24, %29 : vector<1x128xf32>
    %c1_i32_12 = arith.constant 1 : i32
    %31 = vector.broadcast %c1_i32_12 : i32 to vector<1x128xi32>
    %32 = arith.cmpi eq, %6, %31 : vector<1x128xi32>
    %33 = arith.select %32, %29, %27 : vector<1x128xi1>, vector<1x128xf32>
    %c2 = arith.constant 2 : index
    %c0_13 = arith.constant 0 : index
    %c0_14 = arith.constant 0 : index
    %34 = vector.load %arg3[%c2, %c0_13, %c0_14] : memref<6x1x128xf32, #tpu.memory_space<vmem>>, vector<1x1x128xf32>
    %35 = vector.shape_cast %34 : vector<1x1x128xf32> to vector<1x128xf32>
    %36 = arith.maximumf %30, %35 : vector<1x128xf32>
    %c2_i32 = arith.constant 2 : i32
    %37 = vector.broadcast %c2_i32 : i32 to vector<1x128xi32>
    %38 = arith.cmpi eq, %6, %37 : vector<1x128xi32>
    %39 = arith.select %38, %35, %33 : vector<1x128xi1>, vector<1x128xf32>
    %c3 = arith.constant 3 : index
    %c0_15 = arith.constant 0 : index
    %c0_16 = arith.constant 0 : index
    %40 = vector.load %arg3[%c3, %c0_15, %c0_16] : memref<6x1x128xf32, #tpu.memory_space<vmem>>, vector<1x1x128xf32>
    %41 = vector.shape_cast %40 : vector<1x1x128xf32> to vector<1x128xf32>
    %42 = arith.maximumf %36, %41 : vector<1x128xf32>
    %c3_i32 = arith.constant 3 : i32
    %43 = vector.broadcast %c3_i32 : i32 to vector<1x128xi32>
    %44 = arith.cmpi eq, %6, %43 : vector<1x128xi32>
    %45 = arith.select %44, %41, %39 : vector<1x128xi1>, vector<1x128xf32>
    %c4 = arith.constant 4 : index
    %c0_17 = arith.constant 0 : index
    %c0_18 = arith.constant 0 : index
    %46 = vector.load %arg3[%c4, %c0_17, %c0_18] : memref<6x1x128xf32, #tpu.memory_space<vmem>>, vector<1x1x128xf32>
    %47 = vector.shape_cast %46 : vector<1x1x128xf32> to vector<1x128xf32>
    %48 = arith.maximumf %42, %47 : vector<1x128xf32>
    %c4_i32 = arith.constant 4 : i32
    %49 = vector.broadcast %c4_i32 : i32 to vector<1x128xi32>
    %50 = arith.cmpi eq, %6, %49 : vector<1x128xi32>
    %51 = arith.select %50, %47, %45 : vector<1x128xi1>, vector<1x128xf32>
    %c5 = arith.constant 5 : index
    %c0_19 = arith.constant 0 : index
    %c0_20 = arith.constant 0 : index
    %52 = vector.load %arg3[%c5, %c0_19, %c0_20] : memref<6x1x128xf32, #tpu.memory_space<vmem>>, vector<1x1x128xf32>
    %53 = vector.shape_cast %52 : vector<1x1x128xf32> to vector<1x128xf32>
    %54 = arith.maximumf %48, %53 : vector<1x128xf32>
    %c5_i32 = arith.constant 5 : i32
    %55 = vector.broadcast %c5_i32 : i32 to vector<1x128xi32>
    %56 = arith.cmpi eq, %6, %55 : vector<1x128xi32>
    %57 = arith.select %56, %53, %51 : vector<1x128xi1>, vector<1x128xf32>
    %cst_21 = arith.constant 0.000000e+00 : f32
    %58 = vector.broadcast %cst_21 : f32 to vector<1x128xf32>
    %c0_i32_22 = arith.constant 0 : i32
    %59 = vector.broadcast %c0_i32_22 : i32 to vector<1x128xi32>
    %c5_23 = arith.constant 5 : index
    %c0_24 = arith.constant 0 : index
    %c0_25 = arith.constant 0 : index
    %60 = vector.load %arg3[%c5_23, %c0_24, %c0_25] : memref<6x1x128xf32, #tpu.memory_space<vmem>>, vector<1x1x128xf32>
    %61 = vector.shape_cast %60 : vector<1x1x128xf32> to vector<1x128xf32>
    %62 = arith.subf %61, %54 : vector<1x128xf32>
    %63 = math.exp %62 : vector<1x128xf32>
    %64 = arith.addf %58, %63 : vector<1x128xf32>
    %65 = arith.cmpf oge, %61, %54 : vector<1x128xf32>
    %c5_i32_26 = arith.constant 5 : i32
    %66 = vector.broadcast %c5_i32_26 : i32 to vector<1x128xi32>
    %67 = arith.select %65, %66, %59 : vector<1x128xi1>, vector<1x128xi32>
    %c4_27 = arith.constant 4 : index
    %c0_28 = arith.constant 0 : index
    %c0_29 = arith.constant 0 : index
    %68 = vector.load %arg3[%c4_27, %c0_28, %c0_29] : memref<6x1x128xf32, #tpu.memory_space<vmem>>, vector<1x1x128xf32>
    %69 = vector.shape_cast %68 : vector<1x1x128xf32> to vector<1x128xf32>
    %70 = arith.subf %69, %54 : vector<1x128xf32>
    %71 = math.exp %70 : vector<1x128xf32>
    %72 = arith.addf %64, %71 : vector<1x128xf32>
    %73 = arith.cmpf oge, %69, %54 : vector<1x128xf32>
    %c4_i32_30 = arith.constant 4 : i32
    %74 = vector.broadcast %c4_i32_30 : i32 to vector<1x128xi32>
    %75 = arith.select %73, %74, %67 : vector<1x128xi1>, vector<1x128xi32>
    %c3_31 = arith.constant 3 : index
    %c0_32 = arith.constant 0 : index
    %c0_33 = arith.constant 0 : index
    %76 = vector.load %arg3[%c3_31, %c0_32, %c0_33] : memref<6x1x128xf32, #tpu.memory_space<vmem>>, vector<1x1x128xf32>
    %77 = vector.shape_cast %76 : vector<1x1x128xf32> to vector<1x128xf32>
    %78 = arith.subf %77, %54 : vector<1x128xf32>
    %79 = math.exp %78 : vector<1x128xf32>
    %80 = arith.addf %72, %79 : vector<1x128xf32>
    %81 = arith.cmpf oge, %77, %54 : vector<1x128xf32>
    %c3_i32_34 = arith.constant 3 : i32
    %82 = vector.broadcast %c3_i32_34 : i32 to vector<1x128xi32>
    %83 = arith.select %81, %82, %75 : vector<1x128xi1>, vector<1x128xi32>
    %c2_35 = arith.constant 2 : index
    %c0_36 = arith.constant 0 : index
    %c0_37 = arith.constant 0 : index
    %84 = vector.load %arg3[%c2_35, %c0_36, %c0_37] : memref<6x1x128xf32, #tpu.memory_space<vmem>>, vector<1x1x128xf32>
    %85 = vector.shape_cast %84 : vector<1x1x128xf32> to vector<1x128xf32>
    %86 = arith.subf %85, %54 : vector<1x128xf32>
    %87 = math.exp %86 : vector<1x128xf32>
    %88 = arith.addf %80, %87 : vector<1x128xf32>
    %89 = arith.cmpf oge, %85, %54 : vector<1x128xf32>
    %c2_i32_38 = arith.constant 2 : i32
    %90 = vector.broadcast %c2_i32_38 : i32 to vector<1x128xi32>
    %91 = arith.select %89, %90, %83 : vector<1x128xi1>, vector<1x128xi32>
    %c1_39 = arith.constant 1 : index
    %c0_40 = arith.constant 0 : index
    %c0_41 = arith.constant 0 : index
    %92 = vector.load %arg3[%c1_39, %c0_40, %c0_41] : memref<6x1x128xf32, #tpu.memory_space<vmem>>, vector<1x1x128xf32>
    %93 = vector.shape_cast %92 : vector<1x1x128xf32> to vector<1x128xf32>
    %94 = arith.subf %93, %54 : vector<1x128xf32>
    %95 = math.exp %94 : vector<1x128xf32>
    %96 = arith.addf %88, %95 : vector<1x128xf32>
    %97 = arith.cmpf oge, %93, %54 : vector<1x128xf32>
    %c1_i32_42 = arith.constant 1 : i32
    %98 = vector.broadcast %c1_i32_42 : i32 to vector<1x128xi32>
    %99 = arith.select %97, %98, %91 : vector<1x128xi1>, vector<1x128xi32>
    %c0_43 = arith.constant 0 : index
    %c0_44 = arith.constant 0 : index
    %c0_45 = arith.constant 0 : index
    %100 = vector.load %arg3[%c0_43, %c0_44, %c0_45] : memref<6x1x128xf32, #tpu.memory_space<vmem>>, vector<1x1x128xf32>
    %101 = vector.shape_cast %100 : vector<1x1x128xf32> to vector<1x128xf32>
    %102 = arith.subf %101, %54 : vector<1x128xf32>
    %103 = math.exp %102 : vector<1x128xf32>
    %104 = arith.addf %96, %103 : vector<1x128xf32>
    %105 = arith.cmpf oge, %101, %54 : vector<1x128xf32>
    %c0_i32_46 = arith.constant 0 : i32
    %106 = vector.broadcast %c0_i32_46 : i32 to vector<1x128xi32>
    %107 = arith.select %105, %106, %99 : vector<1x128xi1>, vector<1x128xi32>
    %108 = math.log %104 : vector<1x128xf32>
    %109 = arith.subf %57, %54 : vector<1x128xf32>
    %110 = arith.subf %108, %109 : vector<1x128xf32>
    %111 = arith.subi %107, %6 : vector<1x128xi32>
    %112 = math.absi %111 : vector<1x128xi32>
    %113 = arith.sitofp %112 : vector<1x128xi32> to vector<1x128xf32>
    %114 = math.sqrt %113 : vector<1x128xf32>
    %115 = vector.broadcast %5 : f32 to vector<1x128xf32>
    %116 = arith.mulf %115, %114 : vector<1x128xf32>
    %cst_47 = arith.constant 0.000000e+00 : f32
    %117 = vector.broadcast %cst_47 : f32 to vector<1x128xf32>
    %118 = arith.select %16, %110, %117 : vector<1x128xi1>, vector<1x128xf32>
    %cst_48 = arith.constant 0.000000e+00 : f32
    %119 = vector.broadcast %cst_48 : f32 to vector<1x128xf32>
    %120 = arith.select %19, %110, %119 : vector<1x128xi1>, vector<1x128xf32>
    %c0_49 = arith.constant 0 : index
    %c0_50 = arith.constant 0 : index
    %121 = vector.load %arg6[%c0_49, %c0_50] : memref<1x128xf32, #tpu.memory_space<vmem>>, vector<1x128xf32>
    %122 = arith.addf %121, %118 : vector<1x128xf32>
    %c0_51 = arith.constant 0 : index
    %c0_52 = arith.constant 0 : index
    %123 = vector.load %arg6[%c0_51, %c0_52] : memref<1x128xf32, #tpu.memory_space<vmem>>, vector<1x128xf32>
    tpu.vector_store %arg6[%c0_51, %c0_52], %122 {strides = array<i32>} : memref<1x128xf32, #tpu.memory_space<vmem>>, vector<1x128xf32>,
    %c0_53 = arith.constant 0 : index
    %c0_54 = arith.constant 0 : index
    %124 = vector.load %arg7[%c0_53, %c0_54] : memref<1x128xf32, #tpu.memory_space<vmem>>, vector<1x128xf32>
    %cst_55 = arith.constant 1.000000e+00 : f32
    %125 = vector.broadcast %cst_55 : f32 to vector<1x128xf32>
    %126 = arith.addf %125, %116 : vector<1x128xf32>
    %127 = arith.mulf %126, %110 : vector<1x128xf32>
    %cst_56 = arith.constant 0.000000e+00 : f32
    %128 = vector.broadcast %cst_56 : f32 to vector<1x128xf32>
    %129 = arith.select %19, %127, %128 : vector<1x128xi1>, vector<1x128xf32>
    %130 = arith.addf %124, %129 : vector<1x128xf32>
    %c0_57 = arith.constant 0 : index
    %c0_58 = arith.constant 0 : index
    %131 = vector.load %arg7[%c0_57, %c0_58] : memref<1x128xf32, #tpu.memory_space<vmem>>, vector<1x128xf32>
    tpu.vector_store %arg7[%c0_57, %c0_58], %130 {strides = array<i32>} : memref<1x128xf32, #tpu.memory_space<vmem>>, vector<1x128xf32>,
    %c0_59 = arith.constant 0 : index
    %c0_60 = arith.constant 0 : index
    %132 = vector.load %arg8[%c0_59, %c0_60] : memref<1x128xf32, #tpu.memory_space<vmem>>, vector<1x128xf32>
    %133 = arith.subf %118, %120 : vector<1x128xf32>
    %134 = arith.addf %132, %133 : vector<1x128xf32>
    %c0_61 = arith.constant 0 : index
    %c0_62 = arith.constant 0 : index
    %135 = vector.load %arg8[%c0_61, %c0_62] : memref<1x128xf32, #tpu.memory_space<vmem>>, vector<1x128xf32>
    tpu.vector_store %arg8[%c0_61, %c0_62], %134 {strides = array<i32>} : memref<1x128xf32, #tpu.memory_space<vmem>>, vector<1x128xf32>,
    %c0_63 = arith.constant 0 : index
    %c0_64 = arith.constant 0 : index
    %136 = vector.load %arg9[%c0_63, %c0_64] : memref<1x128xf32, #tpu.memory_space<vmem>>, vector<1x128xf32>
    %137 = arith.extui %19 : vector<1x128xi1> to vector<1x128xi32>
    %138 = arith.sitofp %137 : vector<1x128xi32> to vector<1x128xf32>
    %139 = arith.addf %136, %138 : vector<1x128xf32>
    %c0_65 = arith.constant 0 : index
    %c0_66 = arith.constant 0 : index
    %140 = vector.load %arg9[%c0_65, %c0_66] : memref<1x128xf32, #tpu.memory_space<vmem>>, vector<1x128xf32>
    tpu.vector_store %arg9[%c0_65, %c0_66], %139 {strides = array<i32>} : memref<1x128xf32, #tpu.memory_space<vmem>>, vector<1x128xf32>,
    %c0_i32_67 = arith.constant 0 : i32
    %141 = arith.cmpi eq, %arg0, %c0_i32_67 : i32
    %142 = arith.extui %141 : i1 to i32
    %c0_i32_68 = arith.constant 0 : i32
    %143 = arith.cmpi ne, %142, %c0_i32_68 : i32
    scf.if %143 {
      %c0_69 = arith.constant 0 : index
      %c0_70 = arith.constant 0 : index
      %144 = vector.load %arg6[%c0_69, %c0_70] : memref<1x128xf32, #tpu.memory_space<vmem>>, vector<1x128xf32>
      %145 = vector.shape_cast %144 : vector<1x128xf32> to vector<1x1x128xf32>
      %cst_71 = arith.constant dense<0.000000e+00> : vector<1xf32>
      %146 = vector.multi_reduction <add>, %145, %cst_71 [1, 2] : vector<1x1x128xf32> to vector<1xf32>
      %147 = vector.shape_cast %146 : vector<1xf32> to vector<1x1x1xf32>
      %148 = vector.extract %147[0, 0, 0] : f32 from vector<1x1x1xf32>
      %c0_72 = arith.constant 0 : index
      %149 = memref.load %arg5[%c0_72] : memref<8xf32, #tpu.memory_space<smem>>
      memref.store %148, %arg5[%c0_72] : memref<8xf32, #tpu.memory_space<smem>>
      %c0_73 = arith.constant 0 : index
      %c0_74 = arith.constant 0 : index
      %150 = vector.load %arg7[%c0_73, %c0_74] : memref<1x128xf32, #tpu.memory_space<vmem>>, vector<1x128xf32>
      %151 = vector.shape_cast %150 : vector<1x128xf32> to vector<1x1x128xf32>
      %cst_75 = arith.constant dense<0.000000e+00> : vector<1xf32>
      %152 = vector.multi_reduction <add>, %151, %cst_75 [1, 2] : vector<1x1x128xf32> to vector<1xf32>
      %153 = vector.shape_cast %152 : vector<1xf32> to vector<1x1x1xf32>
      %154 = vector.extract %153[0, 0, 0] : f32 from vector<1x1x1xf32>
      %c1_76 = arith.constant 1 : index
      %155 = memref.load %arg5[%c1_76] : memref<8xf32, #tpu.memory_space<smem>>
      memref.store %154, %arg5[%c1_76] : memref<8xf32, #tpu.memory_space<smem>>
      %c0_77 = arith.constant 0 : index
      %c0_78 = arith.constant 0 : index
      %156 = vector.load %arg8[%c0_77, %c0_78] : memref<1x128xf32, #tpu.memory_space<vmem>>, vector<1x128xf32>
      %157 = vector.shape_cast %156 : vector<1x128xf32> to vector<1x1x128xf32>
      %cst_79 = arith.constant dense<0.000000e+00> : vector<1xf32>
      %158 = vector.multi_reduction <add>, %157, %cst_79 [1, 2] : vector<1x1x128xf32> to vector<1xf32>
      %159 = vector.shape_cast %158 : vector<1xf32> to vector<1x1x1xf32>
      %160 = vector.extract %159[0, 0, 0] : f32 from vector<1x1x1xf32>
      %c2_80 = arith.constant 2 : index
      %161 = memref.load %arg5[%c2_80] : memref<8xf32, #tpu.memory_space<smem>>
      memref.store %160, %arg5[%c2_80] : memref<8xf32, #tpu.memory_space<smem>>
      %c0_81 = arith.constant 0 : index
      %c0_82 = arith.constant 0 : index
      %162 = vector.load %arg9[%c0_81, %c0_82] : memref<1x128xf32, #tpu.memory_space<vmem>>, vector<1x128xf32>
      %163 = vector.shape_cast %162 : vector<1x128xf32> to vector<1x1x128xf32>
      %cst_83 = arith.constant dense<0.000000e+00> : vector<1xf32>
      %164 = vector.multi_reduction <add>, %163, %cst_83 [1, 2] : vector<1x1x128xf32> to vector<1xf32>
      %165 = vector.shape_cast %164 : vector<1xf32> to vector<1x1x1xf32>
      %166 = vector.extract %165[0, 0, 0] : f32 from vector<1x1x1xf32>
      %c3_84 = arith.constant 3 : index
      %167 = memref.load %arg5[%c3_84] : memref<8xf32, #tpu.memory_space<smem>>
      memref.store %166, %arg5[%c3_84] : memref<8xf32, #tpu.memory_space<smem>>
      %cst_85 = arith.constant 0.000000e+00 : f32
      %c4_86 = arith.constant 4 : index
      %168 = memref.load %arg5[%c4_86] : memref<8xf32, #tpu.memory_space<smem>>
      memref.store %cst_85, %arg5[%c4_86] : memref<8xf32, #tpu.memory_space<smem>>
      %cst_87 = arith.constant 0.000000e+00 : f32
      %c5_88 = arith.constant 5 : index
      %169 = memref.load %arg5[%c5_88] : memref<8xf32, #tpu.memory_space<smem>>
      memref.store %cst_87, %arg5[%c5_88] : memref<8xf32, #tpu.memory_space<smem>>
      %cst_89 = arith.constant 0.000000e+00 : f32
      %c6 = arith.constant 6 : index
      %170 = memref.load %arg5[%c6] : memref<8xf32, #tpu.memory_space<smem>>
      memref.store %cst_89, %arg5[%c6] : memref<8xf32, #tpu.memory_space<smem>>
      %cst_90 = arith.constant 0.000000e+00 : f32
      %c7 = arith.constant 7 : index
      %171 = memref.load %arg5[%c7] : memref<8xf32, #tpu.memory_space<smem>>
      memref.store %cst_90, %arg5[%c7] : memref<8xf32, #tpu.memory_space<smem>>
    } else {
    }
    return
  }
  func.func @transform_0(%arg0: i32, %arg1: memref<2xi32, #tpu.memory_space<smem>>, %arg2: memref<1xf32, #tpu.memory_space<smem>>) -> (i32, i32, i32) {
    %c0_i32 = arith.constant 0 : i32
    %c0_i32_0 = arith.constant 0 : i32
    %c0_i32_1 = arith.constant 0 : i32
    return %c0_i32, %arg0, %c0_i32_0 : i32, i32, i32
  }
  func.func @transform_1(%arg0: i32, %arg1: memref<2xi32, #tpu.memory_space<smem>>, %arg2: memref<1xf32, #tpu.memory_space<smem>>) -> (i32, i32) {
    %c0_i32 = arith.constant 0 : i32
    %c0_i32_0 = arith.constant 0 : i32
    return %arg0, %c0_i32 : i32, i32
  }
  func.func @transform_2(%arg0: i32, %arg1: memref<2xi32, #tpu.memory_space<smem>>, %arg2: memref<1xf32, #tpu.memory_space<smem>>) -> i32 {
    %c0_i32 = arith.constant 0 : i32
    %c0_i32_0 = arith.constant 0 : i32
    return %c0_i32 : i32
  }
}

</mosaic_0001>

<bundles_post_ra>
// kernel: tpu_custom_call.1
= control target key start
LH: loop header
LB: loop body
LE: loop exit
PB: predicated region body
PF: predicated region fallthrough
CT: control target
= control target key end

     0   :  { %s448_s0 = inlined_call_operand.vmem [shape: s32[2], index: 0, kind: input, shape index: {}]   ;;  %s449_s1 = inlined_call_operand.<no memory space> [shape: f32[1], index: 1, kind: input, shape index: {}]   ;;  %s450_s2 = inlined_call_operand.hbm [shape: f32[6,1,128], index: 2, kind: input, shape index: {}]   ;;  %s451_s3 = inlined_call_operand.vmem [shape: s32[1,128], index: 3, kind: input, shape index: {}]   ;;  %s452_s4 = inlined_call_operand.hbm [shape: f32[8], index: 4, kind: output, shape index: {}]  }
   0x1   :  { %s9_s17 = sshll.u32 %s448_s0, 4  ;;  %s10_s17 = int_to_ptr.vmem [resolvable:$true] %s9_s17 }
   0x2   :  { %s275_s18 = scalar_lea.vmem %s10_s17, 16  ;;  %p280_p1 = scmp.lt.s32.totalorder %s10_s17, %s10_s17 }
   0x3   :  { %p276_p0 = scmp.ne.s32.totalorder %s10_s17, %s275_s18  ;;  %p281_p2 = scmp.lt.s32.totalorder %s275_s18, %s275_s18 }
   0x5   :  { %p282_p3 = por %p281_p2, %p280_p1 }
   0x7   :  { %p283_p4 = pnand %p282_p3, %p276_p0 }
   0x9   :  { %286 = shalt.err (!%p283_p4)  }
   0xa   :  { %s321_s19 = smov [#allocation7]  }
   0xb   :  { %12 = dma.vmem_to_smem %s10_s17, 16, %s321_s19, [#allocation6] }
   0xc   :  { %315 = dma.done.wait [#allocation6], 16 }
   0xd   :  { %316 = vsyncadd [#allocation6], 4294967280 }
   0xe   :  { %15 = sfence }
   0xf   :  { %16 = vsyncpa [#allocation10], 0 }
  0x10   :  { %17 = vsyncpa [#allocation11], 0  ;;  %s322_s20 = smov [#allocation9]  }
  0x11   :  { %s23_s21 = sshll.u32 %s322_s20, 4  ;;  %s24_s21 = int_to_ptr.vmem [resolvable:$true] %s23_s21 }
  0x12   :  { %s295_s22 = scalar_lea.vmem %s24_s21, 96  ;;  %p300_p6 = scmp.lt.s32.totalorder %s24_s21, %s24_s21 }
  0x13   :  { %p296_p5 = scmp.ne.s32.totalorder %s24_s21, %s295_s22  ;;  %p301_p7 = scmp.lt.s32.totalorder %s295_s22, %s295_s22 }
  0x15   :  { %p302_p8 = por %p301_p7, %p300_p6 }
  0x17   :  { %p303_p9 = pnand %p302_p8, %p296_p5 }
  0x19   :  { %306 = shalt.err (!%p303_p9)
}
  0x1a   :  { %s323_s0 = smov 16   ;;  %s324_s23 = smov 1  }
  0x1b   :  { %29 = dma.hbm_to_vmem [thread:$0]  %s450_s2, 96, %s24_s21, [#allocation10], %s323_s0, %s323_s0, %s324_s23  }
  0x1c   :  { %317 = dma.done.wait [#allocation10], 96  }
  0x1d   :  { %318 = vsyncadd [#allocation10], 4294967200  ;;  %v47_v0 = vlaneseq  ;;  %v325_v1 = vmov 0.0   ;;  %s43_s26 = sld [smem:[#allocation7]]  ;;  %v363_v6 = vld [vmem:[%s451_s3] sm:$0x1] }
  0x1e   :  { %39 = vst [vmem:[#allocation2] sm:$0x1] %v325_v1  ;;  %40 = vst [vmem:[#allocation3] sm:$0x1] %v325_v1  ;;  %s240_s27 = sld [smem:[#allocation7 + $0x1]]  ;;  %v326_v27 = vmov 0  }
  0x1f   :  { %41 = vst [vmem:[#allocation4] sm:$0x1] %v325_v1  ;;  %42 = vst [vmem:[#allocation5] sm:$0x1] %v325_v1  ;;  %v48_v2 = vshrl.u32 %v47_v0, 7  ;;  %v50_v3 = vand.u32 127, %v47_v0 }
  0x20   :  { %v365_v8 = vld [vmem:[#allocation9] sm:$0x1]  ;;  %v367_v9 = vld [vmem:[#allocation9 + $0x1] sm:$0x1]  ;;  %v372_v12 = vld [vmem:[#allocation9 + $0x2] sm:$0x1] }
  0x21   :  { %v53_v4 = vmul.u32 128, %v48_v2  ;;  %v65_v11 = vmax.f32 %v365_v8, %v367_v9  ;;  %v378_v14 = vld [vmem:[#allocation9 + $0x3] sm:$0x1]  ;;  %v387_v17 = vld [vmem:[#allocation9 + $0x4] sm:$0x1]  ;;  %vm61_vm9 = vcmp.eq.s32.totalorder %v363_v6, 0 }
  0x22   :  { %v392_v21 = vld [vmem:[#allocation9 + $0x5] sm:$0x1]  ;;  %v62_v55 = vsel %vm61_vm9, %v365_v8, 0.0  ;;  %vm66_vm10 = vcmp.eq.s32.totalorder %v363_v6, 1  ;;  %vm71_vm11 = vcmp.eq.s32.totalorder %v363_v6, 2  ;;  %vm76_vm12 = vcmp.eq.s32.totalorder %v363_v6, 3 }
  0x23   :  { %v54_v5 = vadd.s32 %v53_v4, %v50_v3  ;;  %v57_v7 = vstv %s43_s26  ;;  %v70_v16 = vmax.f32 %v65_v11, %v372_v12  ;;  %v67_v59 = vsel %vm66_vm10, %v367_v9, %v62_v55  ;;  %s328_s8 = smov [#allocation12]  }
  0x24   :  { %v55_v10 = vstv %s240_s27  ;;  %vm58_vm0 = vcmp.lt.s32.totalorder %v363_v6, %v57_v7  ;;  %v72_v62 = vsel %vm71_vm11, %v372_v12, %v67_v59  ;;  %vm81_vm14 = vcmp.eq.s32.totalorder %v363_v6, 4 }
  0x25   :  { %vm374_vm1 = vcmp.lt.s32.totalorder %v54_v5, %v55_v10  ;;  %v75_v19 = vmax.f32 %v70_v16, %v378_v14  ;;  %v77_v0 = vsel %vm76_vm12, %v378_v14, %v72_v62  ;;  %v140_v5 = vstv %s449_s1  ;;  %v144_v16 = vld [vmem:[#allocation2] sm:$0x1]  ;;  %s327_s1 = smov 0.0  }
  0x26   :  { %vm382_vm2 = vmand %vm58_vm0, %vm374_vm1  ;;  %v157_v20 = vld [vmem:[#allocation5] sm:$0x1]  ;;  %v82_v3 = vsel %vm81_vm14, %v387_v17, %v77_v0  ;;  %vm86_vm0 = vcmp.eq.s32.totalorder %v363_v6, 5  ;;  %219 = sst [smem:[#allocation12 + $0x4]] %s327_s1 }
  0x27   :  { %v242_v18 = vsel %vm382_vm2, 1.0, %v325_v1  ;;  %v80_v23 = vmax.f32 %v75_v19, %v387_v17  ;;  %v87_v7 = vsel %vm86_vm0, %v392_v21, %v82_v3  ;;  %v147_v19 = vld [vmem:[#allocation3] sm:$0x1]  ;;  %221 = sst [smem:[#allocation12 + $0x5]] %s327_s1 }
  0x28   :  { %v160_v22 = vadd.f32 %v242_v18, %v157_v20  ;;  %v153_v18 = vld [vmem:[#allocation4] sm:$0x1]  ;;  %223 = sst [smem:[#allocation12 + $0x6]] %s327_s1 }
  0x29   :  { %v396_v24 = vmax.f32 %v80_v23, %v392_v21  ;;  %225 = sst [smem:[#allocation12 + $0x7]] %s327_s1 }
  0x2a   :  { %161 = vst [vmem:[#allocation5] sm:$0x1] %v160_v22 }
  0x2b   :  { %v88_v25 = vsub.f32 %v392_v21, %v396_v24  ;;  %vm92_vm3 = vcmp.ge.f32.partialorder %v392_v21, %v396_v24  ;;  %v94_v26 = vsub.f32 %v387_v17, %v396_v24  ;;  %vm98_vm4 = vcmp.ge.f32.partialorder %v387_v17, %v396_v24 }
  0x2c   :  { %v93_v28 = vsel %vm92_vm3, 5, %v326_v27  ;;  %v100_v29 = vsub.f32 %v378_v14, %v396_v24  ;;  %vm104_vm5 = vcmp.ge.f32.partialorder %v378_v14, %v396_v24  ;;  %v106_v30 = vsub.f32 %v372_v12, %v396_v24 }
  0x2d   :  { %v89_v31 = vmul.f32 1.442695, %v88_v25  ;;  %v95_v32 = vmul.f32 1.442695, %v94_v26  ;;  %v99_v33 = vsel %vm98_vm4, 4, %v93_v28  ;;  %vm110_vm6 = vcmp.ge.f32.partialorder %v372_v12, %v396_v24 }
  0x2e   :  { %v101_v34 = vmul.f32 1.442695, %v100_v29  ;;  %v105_v35 = vsel %vm104_vm5, 3, %v99_v33  ;;  %v107_v36 = vmul.f32 1.442695, %v106_v30  ;;  %v112_v37 = vsub.f32 %v367_v9, %v396_v24 }
  0x2f   :  { %259 = vpow2.f32 %v89_v31  ;;  %v111_v38 = vsel %vm110_vm6, 2, %v105_v35  ;;  %vm116_vm7 = vcmp.ge.f32.partialorder %v367_v9, %v396_v24  ;;  %v118_v39 = vsub.f32 %v365_v8, %v396_v24 }
  0x30   :  { %261 = vpow2.f32 %v95_v32  ;;  %v113_v40 = vmul.f32 1.442695, %v112_v37  ;;  %v117_v41 = vsel %vm116_vm7, 1, %v111_v38  ;;  %vm122_vm8 = vcmp.ge.f32.partialorder %v365_v8, %v396_v24 }
  0x31   :  { %263 = vpow2.f32 %v101_v34  ;;  %v123_v42 = vsel %vm122_vm8, 0, %v117_v41  ;;  %v119_v43 = vmul.f32 1.442695, %v118_v39  ;;  %v126_v9 = vsub.f32 %v87_v7, %v396_v24  ;;  %v205_v29 = vld [vmem:[#allocation5] sm:$0x1] }
  0x32   :  { %265 = vpow2.f32 %v107_v36  ;;  %v128_v44 = vsub.s32 %v123_v42, %v363_v6  ;;  %vm166_vm3 = vcmask 1040384  }
  0x33   :  { %267 = vpow2.f32 %v113_v40  ;;  %v206_v32 = vsel %vm166_vm3, %v205_v29, 0.0 }
  0x34   :  { %v130_v45 = vsub.s32 0, %v128_v44  ;;  %269 = vpow2.f32 %v119_v43 }
  0x36   :  { %v241_v46 = vmin.u32 %v130_v45, %v128_v44 }
  0x38   :  { %v132_v47 = vcvt.s32.f32 %v241_v46 }
  0x3a   :  { %271 = vrsqrt.f32 %v132_v47  ;;  %vm135_vm13 = vcmp.eq.f32.partialorder %v132_v47, inf  ;;  %v138_v1 = vand.u32 2147483648, %v132_v47  ;;  %vm137_vm15 = vcmp.eq.f32.partialorder %v132_v47, 0.0 }
  0x3c   :  { %v260_v48 = vpop.eup %259 }
  0x3d   :  { %v262_v49 = vpop.eup %261 }
  0x3e   :  { %v264_v50 = vpop.eup %263  ;;  %v97_v51 = vadd.f32 %v262_v49, %v260_v48 }
  0x3f   :  { %v266_v52 = vpop.eup %265 }
  0x40   :  { %v103_v53 = vadd.f32 %v264_v50, %v97_v51  ;;  %v268_v54 = vpop.eup %267 }
  0x41   :  { %v270_v57 = vpop.eup %269 }
  0x42   :  { %v109_v56 = vadd.f32 %v266_v52, %v103_v53 }
  0x44   :  { %v115_v58 = vadd.f32 %v268_v54, %v109_v56 }
  0x46   :  { %v121_v60 = vadd.f32 %v270_v57, %v115_v58 }
  0x47   :  { %v272_v61 = vpop.eup %271 }
  0x48   :  { %273 = vlog2.f32 %v121_v60  ;;  %v134_v63 = vmul.f32 %v272_v61, %v132_v47 }
  0x4a   :  { %v136_v2 = vsel %vm135_vm13, %v132_v47, %v134_v63 }
  0x4b   :  { %v139_v4 = vsel %vm137_vm15, %v138_v1, %v136_v2 }
  0x4c   :  { %v141_v8 = vmul.f32 %v140_v5, %v139_v4 }
  0x4e   :  { %v148_v12 = vadd.f32 1.0, %v141_v8 }
  0x55   :  { %v274_v10 = vpop.eup %273 }
  0x56   :  { %v125_v11 = vmul.f32 0.6931472, %v274_v10 }
  0x58   :  { %v127_v14 = vsub.f32 %v125_v11, %v126_v9 }
  0x5a   :  { %v142_v17 = vsel %vm374_vm1, %v127_v14, 0.0  ;;  %v143_v6 = vsel %vm382_vm2, %v127_v14, 0.0  ;;  %v149_v20 = vmul.f32 %v148_v12, %v127_v14 }
  0x5b   :  { %v145_v22 = vadd.f32 %v144_v16, %v142_v17  ;;  %v154_v23 = vsub.f32 %v142_v17, %v143_v6 }
  0x5c   :  { %v150_v21 = vsel %vm382_vm2, %v149_v20, 0.0 }
  0x5d   :  { %146 = vst [vmem:[#allocation2] sm:$0x1] %v145_v22  ;;  %v155_v24 = vadd.f32 %v154_v23, %v153_v18  ;;  %v151_v25 = vadd.f32 %v150_v21, %v147_v19 }
  0x5f   :  { %156 = vst [vmem:[#allocation4] sm:$0x1] %v155_v24  ;;  %152 = vst [vmem:[#allocation3] sm:$0x1] %v151_v25 }
  0x64   :  { %v165_v26 = vld [vmem:[#allocation2] sm:$0x1] }
  0x65   :  { %v167_v13 = vsel %vm166_vm3, %v165_v26, 0.0 }
  0x66   :  { %168 = vadd.xlane.f32.xlu0 %v167_v13  ;;  %v192_v27 = vld [vmem:[#allocation4] sm:$0x1]  ;;  %v179_v28 = vld [vmem:[#allocation3] sm:$0x1] }
  0x67   :  { %v193_v30 = vsel %vm166_vm3, %v192_v27, 0.0  ;;  %v180_v31 = vsel %vm166_vm3, %v179_v28, 0.0 }
  0x68   :  { %194 = vadd.xlane.f32.xlu1 %v193_v30 }
  0x6a   :  { %181 = vadd.xlane.f32.xlu0 %v180_v31 }
  0x6c   :  { %207 = vadd.xlane.f32.xlu1 %v206_v32 }
  0xef   :  { %v169_v15 = vpop.xlane.xlu0 %168 }
  0xf0   :  { %v170_v33 = vrot.slane %v169_v15, 4 }
  0xf1   :  { %v195_v34 = vpop.xlane.xlu1 %194 }
  0xf2   :  { %v171_v35 = vadd.f32 %v170_v33, %v169_v15  ;;  %v196_v36 = vrot.slane %v195_v34, 4 }
  0xf3   :  { %v182_v37 = vpop.xlane.xlu0 %181 }
  0xf4   :  { %v172_v38 = vrot.slane %v171_v35, 2  ;;  %v197_v39 = vadd.f32 %v196_v36, %v195_v34  ;;  %v183_v40 = vrot.slane %v182_v37, 4 }
  0xf5   :  { %v208_v41 = vpop.xlane.xlu1 %207 }
  0xf6   :  { %v198_v42 = vrot.slane %v197_v39, 2  ;;  %v184_v43 = vadd.f32 %v183_v40, %v182_v37  ;;  %v209_v44 = vrot.slane %v208_v41, 4  ;;  %v173_v45 = vadd.f32 %v172_v38, %v171_v35 }
  0xf8   :  { %v185_v46 = vrot.slane %v184_v43, 2  ;;  %v210_v47 = vadd.f32 %v209_v44, %v208_v41  ;;  %v174_v48 = vrot.slane %v173_v45, 1  ;;  %v199_v49 = vadd.f32 %v198_v42, %v197_v39 }
  0xfa   :  { %v186_v50 = vadd.f32 %v185_v46, %v184_v43  ;;  %v211_v51 = vrot.slane %v210_v47, 2  ;;  %v175_v52 = vadd.f32 %v174_v48, %v173_v45  ;;  %v200_v53 = vrot.slane %v199_v49, 1 }
  0xfc   :  { %v212_v54 = vadd.f32 %v211_v51, %v210_v47  ;;  %243 = vpush %v175_v52  ;;  %v187_v55 = vrot.slane %v186_v50, 1  ;;  %v201_v58 = vadd.f32 %v200_v53, %v199_v49 }
  0xfe   :  { %v188_v56 = vadd.f32 %v187_v55, %v186_v50  ;;  %v213_v57 = vrot.slane %v212_v54, 1 }
 0x100   :  { %245 = vpush %v188_v56  ;;  %v214_v59 = vadd.f32 %v213_v57, %v212_v54 }
 0x101   :  { %247 = vpush %v201_v58 }
 0x102   :  { %249 = vpush %v214_v59 }
 0x12d   :  { %s244_s30 = spop %243 }
 0x12e   :  { %178 = sst [smem:[#allocation12]] %s244_s30 }
 0x131   :  { %s246_s5 = spop %245 }
 0x132   :  { %191 = sst [smem:[#allocation12 + $0x1]] %s246_s5  ;;  %s248_s6 = spop %247 }
 0x133   :  { %204 = sst [smem:[#allocation12 + $0x2]] %s248_s6  ;;  %s250_s7 = spop %249 }
 0x134   :  { %217 = sst [smem:[#allocation12 + $0x3]] %s250_s7 }
 0x135   :  { %233 = dma.smem_to_hbm %s328_s8, 16, %s452_s4, [#allocation11]  }
 0x136   :  { %319 = dma.done.wait [#allocation11], 16  }
 0x137   :  { %320 = vsyncadd [#allocation11], 4294967280 }
 0x138   :  { %237 = sfence }
 0x139   :  { %238 = vsyncpa [#allocation10], 1 }
 0x13a   :  { %239 = vsyncpa [#allocation11], 1 }

</bundles_post_ra>
